<compile_context>
chip_gen: v7x
topology: tpu7x:2x2x1
jax: 0.10.0
libtpu: 0.0.40
codegen_flags: <defaults>
</compile_context>

<pallas_src>
import jax
import jax.numpy as jnp
from jax.experimental import pallas as pl
from jax.experimental.pallas import tpu as pltpu

# ----- config defaults (mirror retrieve(..., default=...)) -----
KL_WEIGHT = 1.0
GAMMA_INIT = KL_WEIGHT          # RoDi/gamma_init default = elbo.kl_weight
LAMBDA_INIT = 0.0               # MIMin/lambda_init
MU_C = 0.1                      # MIMin/mu
EPS_C = 0.1                     # MIMin/eps
WARMUP_IT = 1000                # MIMin/warmup_it
B_GAMMA = 0.01                  # RoDi/b_gamma

_LANE = 128                     # vreg lane width
_TILE_ROWS = 1024               # 1024*128*4B = 512 KiB / input / buffer;
                                # 4 inputs x 2 pipeline buffers = 4 MiB, well
                                # inside the 32 MiB scoped VMEM limit below.
_NCORES = 2                     # leading "parallel" grid axis: dual-TensorCore
                                # split of the HBM-bound elbo reduction on v7x
                                # (harmless sequential split elsewhere).

# Optional: stream the four image tensors as bf16 (halves HBM bytes of the
# bandwidth-bound elbo kernel).  Off by default to keep the squared-error sums
# bit-comparable to the f32 reference.
ELBO_STREAM_BF16 = False


def _softplus(x):
    # numerically stable softplus
    return jnp.maximum(x, 0.0) + jnp.log1p(jnp.exp(-jnp.abs(x)))


# ---------------------------------------------------------------------------
# Kernel 1: Elbo reductions (rec_loss, aux_loss, kl_loss), tiled + pipelined,
#           2-way core-parallel leading grid axis.
# ---------------------------------------------------------------------------
def elbo_kernel(xt_ref, xo_ref, api_ref, aal_ref, mu_ref, lv_ref,
                out_ref, rec_acc, aux_acc):
    c = pl.program_id(0)            # core / partial index ("parallel")
    i = pl.program_id(1)            # row-tile index       ("arbitrary")

    @pl.when(i == 0)
    def _init():
        rec_acc[...] = jnp.zeros_like(rec_acc)
        aux_acc[...] = jnp.zeros_like(aux_acc)

    xt = xt_ref[...].astype(jnp.float32)                   # (TR, 128) tile
    d = xt - xo_ref[...].astype(jnp.float32)
    rec_acc[...] += jnp.sum(d * d, axis=0, keepdims=True)               # (1, 128)
    d1 = xt - api_ref[...].astype(jnp.float32)
    d2 = xt - aal_ref[...].astype(jnp.float32)
    aux_acc[...] += jnp.sum(0.5 * (d1 * d1 + d2 * d2), axis=0, keepdims=True)

    @pl.when(i == pl.num_programs(1) - 1)
    def _finalize():
        # Latents are small; kept fully resident (constant index_map).
        mu = mu_ref[...]
        lv = lv_ref[...]
        # diag-Gaussian KL to N(0, I); zero-padded rows contribute exactly 0.
        # Only partial c == 0 carries the KL term so the cross-core sum is exact.
        kl_gate = (c == 0).astype(jnp.float32)
        kl = kl_gate * jnp.sum(0.5 * (mu * mu + jnp.exp(lv) - 1.0 - lv),
                               keepdims=True)
        rec = jnp.sum(rec_acc[...], keepdims=True)
        aux = jnp.sum(aux_acc[...], keepdims=True)
        ri = jax.lax.broadcasted_iota(jnp.int32, (8, _LANE), 0)
        li = jax.lax.broadcasted_iota(jnp.int32, (8, _LANE), 1)
        out_ref[...] = (ri == 0).astype(jnp.float32) * (
            rec * (li == 0).astype(jnp.float32)
            + aux * (li == 1).astype(jnp.float32)
            + kl * (li == 2).astype(jnp.float32))


def _to_rows(a, row_multiple, dtype=jnp.float32):
    """Flatten, zero-pad (sum-neutral for rec/aux/KL) and pack as (rows, 128)."""
    f = a.reshape(-1).astype(dtype)
    rows = -(-f.size // _LANE)
    rows_p = -(-rows // row_multiple) * row_multiple
    pad = rows_p * _LANE - f.size
    if pad:
        f = jnp.pad(f, (0, pad))
    return f.reshape(rows_p, _LANE)


def elbo_reduce(x_target, x_out, auxpi_out, auxal_out, mu, logvar):
    B = x_target.shape[0]
    img_rows = -(-x_target.size // _LANE)
    if img_rows >= _NCORES * _TILE_ROWS:
        tr = _TILE_ROWS
    else:
        tr = max(8, -(-img_rows // (_NCORES * 8)) * 8)

    img_dtype = jnp.bfloat16 if ELBO_STREAM_BF16 else jnp.float32
    xt, xo, api, aal = (_to_rows(a, _NCORES * tr, img_dtype)
                        for a in (x_target, x_out, auxpi_out, auxal_out))
    mu2 = _to_rows(mu, 8)            # latent stays fully resident, f32
    lv2 = _to_rows(logvar, 8)
    steps_per_core = xt.shape[0] // (_NCORES * tr)

    img_spec = pl.BlockSpec((tr, _LANE), lambda c, i: (c * steps_per_core + i, 0))
    lat_spec = lambda arr: pl.BlockSpec(arr.shape, lambda c, i: (0, 0))

    out = pl.pallas_call(
        elbo_kernel,
        grid=(_NCORES, steps_per_core),
        in_specs=[img_spec, img_spec, img_spec, img_spec,
                  lat_spec(mu2), lat_spec(lv2)],
        out_specs=pl.BlockSpec((8, _LANE), lambda c, i: (c, 0)),
        out_shape=jax.ShapeDtypeStruct((_NCORES * 8, _LANE), jnp.float32),
        scratch_shapes=[pltpu.VMEM((1, _LANE), jnp.float32),
                        pltpu.VMEM((1, _LANE), jnp.float32)],
        compiler_params=pltpu.CompilerParams(
            dimension_semantics=("parallel", "arbitrary"),
            vmem_limit_bytes=32 * 1024 * 1024),
    )(xt, xo, api, aal, mu2, lv2)

    s = out.reshape(_NCORES, 8, _LANE).sum(axis=0)      # sum the per-core partials
    inv_b = 1.0 / B
    return s[0, 0] * inv_b, s[0, 1] * inv_b, s[0, 2] * inv_b


# ---------------------------------------------------------------------------
# Kernel 2: fused MI forward — sampling + 3 estimators x (joint, marginal)
# ---------------------------------------------------------------------------
def mi_fused_kernel(mu_ref, lv_ref, ne_ref, nr_ref, zal_ref,
                    w1pe_ref, w1pr_ref, w1a_ref, b1_ref,
                    w2b_ref, b2_ref, w3b_ref, b3_ref, out_ref):
    f32 = jnp.float32
    bf16 = jnp.bfloat16
    B = mu_ref.shape[0]

    # --- reparameterization in VMEM (exp on EUP; std shared by both samples) ---
    mu = mu_ref[...]
    std = jnp.exp(0.5 * lv_ref[...])
    z_e = (mu + std * ne_ref[...]).astype(bf16)   # p_pi.sample() inside Elbo -> est 0
    z_r = (mu + std * nr_ref[...]).astype(bf16)   # p_pi.sample() used by RoDi -> est 1,2
    zal = zal_ref[...].astype(bf16)

    # --- layer-1 projections: bf16 MXU operands, f32 accumulation ---
    # w1pe / w1pr are (D, 128) with zero column blocks so estimator 0 reads z_e
    # and estimators 1,2 read z_r; one add fuses them lane-densely.
    p_all = (jnp.dot(z_e, w1pe_ref[...], preferred_element_type=f32)
             + jnp.dot(z_r, w1pr_ref[...], preferred_element_type=f32))    # (B, 128)
    g_j = jnp.dot(zal, w1a_ref[...], preferred_element_type=f32)           # (B, 128)

    # --- marginal branch via g_m = flip_rows(g_j): the antidiagonal permutation
    #     is applied to the narrow (B, 128) activation, not the (B, D) latent,
    #     so no flipped z_al copy and no second (B,D)@(D,128) matmul. ---
    r = jax.lax.broadcasted_iota(jnp.int32, (B, B), 0)
    c = jax.lax.broadcasted_iota(jnp.int32, (B, B), 1)
    flip_m = (r + c == B - 1).astype(f32)
    g_m = jnp.dot(flip_m, g_j, preferred_element_type=f32)                 # (B, 128)

    b1 = b1_ref[...]
    w2b = w2b_ref[...]                 # block-diagonal (128, 128), bf16
    b2 = b2_ref[...]
    w3b = w3b_ref[...]                 # block-structured final layer (128, 128), bf16
    b3 = b3_ref[...]                   # (1, 128); lanes 0..2 hold the biases

    def head(g):
        h1 = jnp.maximum(p_all + g + b1, 0.0).astype(bf16)
        h2 = jnp.maximum(jnp.dot(h1, w2b, preferred_element_type=f32) + b2, 0.0)
        # one block-structured matmul yields all 3 estimators' logits in lanes 0..2
        return jnp.dot(h2.astype(bf16), w3b, preferred_element_type=f32) + b3

    lj = head(g_j)                     # (B, 128) joint logits (lanes 0..2 valid)
    lm = head(g_m)                     # (B, 128) marginal logits

    inv_b = 1.0 / B
    mi_vec = jnp.sum(lj, axis=0, keepdims=True) * inv_b                    # (1, 128)
    loss_vec = 0.5 * inv_b * jnp.sum(_softplus(-lj) + _softplus(lm),
                                     axis=0, keepdims=True)
    acc_vec = 0.5 * inv_b * (jnp.sum((lj > 0.0).astype(f32), axis=0, keepdims=True)
                             + jnp.sum((lm < 0.0).astype(f32), axis=0, keepdims=True))

    ri = jax.lax.broadcasted_iota(jnp.int32, (8, out_ref.shape[1]), 0)
    out_ref[...] = (mi_vec * (ri == 0).astype(f32)
                    + loss_vec * (ri == 1).astype(f32)
                    + acc_vec * (ri == 2).astype(f32))                     # (8, 128)


def pack_mi_params(params):
    """Pack the three estimators' weights into lane-dense (128-padded) fused
    operands; matmul weights cast to bf16, biases kept f32."""
    p0, p1, p2 = params["mi"], params["mi1"], params["mi2"]
    D, H = p0["w1p"].shape
    HP = max(_LANE, -(-3 * H // _LANE) * _LANE)        # lane-pad 3H -> mult of 128
    f32, bf16 = jnp.float32, jnp.bfloat16

    w1pe = jnp.zeros((D, HP), f32).at[:, 0:H].set(p0["w1p"])
    w1pr = (jnp.zeros((D, HP), f32)
            .at[:, H:2 * H].set(p1["w1p"])
            .at[:, 2 * H:3 * H].set(p2["w1p"]))
    w1a = (jnp.zeros((D, HP), f32)
           .at[:, 0:H].set(p0["w1a"])
           .at[:, H:2 * H].set(p1["w1a"])
           .at[:, 2 * H:3 * H].set(p2["w1a"]))
    b1 = (jnp.zeros((1, HP), f32)
          .at[:, 0:H].set(p0["b1"])
          .at[:, H:2 * H].set(p1["b1"])
          .at[:, 2 * H:3 * H].set(p2["b1"]))
    b2 = (jnp.zeros((1, HP), f32)
          .at[:, 0:H].set(p0["b2"])
          .at[:, H:2 * H].set(p1["b2"])
          .at[:, 2 * H:3 * H].set(p2["b2"]))
    w2b = jnp.zeros((HP, HP), f32)
    w3b = jnp.zeros((HP, HP), f32)      # column e = estimator e's w3 in its row block
    b3 = jnp.zeros((1, HP), f32)
    for e, p in enumerate((p0, p1, p2)):
        w2b = w2b.at[e * H:(e + 1) * H, e * H:(e + 1) * H].set(p["w2"])
        w3b = w3b.at[e * H:(e + 1) * H, e].set(p["w3"][:, 0])
        b3 = b3.at[0, e].set(p["b3"][0, 0])
    return (w1pe.astype(bf16), w1pr.astype(bf16), w1a.astype(bf16), b1,
            w2b.astype(bf16), b2, w3b.astype(bf16), b3)


def mi_fused(mu_f, lv_f, noise_e, noise_r, z_al_f, packed):
    """Returns an (8,128) array: row 0 = mi, row 1 = loss, row 2 = acc, with
    lane e = estimator e (0: mi, 1: mi1, 2: mi2)."""
    B, D = mu_f.shape
    w1pe, w1pr, w1a, b1, w2b, b2, w3b, b3 = packed
    HP = w1a.shape[1]

    full = lambda a: pl.BlockSpec(a.shape, lambda i: (0, 0))

    flops = 2 * (3 * B * D * HP + B * B * HP + 4 * B * HP * HP)
    transcendentals = B * D + 4 * B * HP
    bytes_accessed = (4 * 5 * B * D + 2 * (3 * D * HP + 2 * HP * HP)
                      + 4 * 3 * HP + 4 * 8 * HP)

    out = pl.pallas_call(
        mi_fused_kernel,
        grid=(1,),
        in_specs=[full(a) for a in
                  (mu_f, lv_f, noise_e, noise_r, z_al_f,
                   w1pe, w1pr, w1a, b1, w2b, b2, w3b, b3)],
        out_specs=pl.BlockSpec((8, HP), lambda i: (0, 0)),
        out_shape=jax.ShapeDtypeStruct((8, HP), jnp.float32),
        compiler_params=pltpu.CompilerParams(
            dimension_semantics=("arbitrary",),
            # explicit limit: v5e's scoped default is only 16 MiB
            vmem_limit_bytes=32 * 1024 * 1024),
        cost_estimate=pl.CostEstimate(flops=flops,
                                      transcendentals=transcendentals,
                                      bytes_accessed=bytes_accessed),
    )(mu_f, lv_f, noise_e, noise_r, z_al_f,
      w1pe, w1pr, w1a, b1, w2b, b2, w3b, b3)
    return out


# ---------------------------------------------------------------------------
# RoDi.forward (scalar glue in plain JAX)
# ---------------------------------------------------------------------------
def rodi_forward(x_target, x_out, mu_pi, logvar_pi, z_al, auxpi_out, auxal_out,
                 global_step, params, noise_elbo, noise_rodi, gamma, lambda_):
    B = x_target.shape[0]
    f32 = jnp.float32

    # ---- Elbo reductions (tiled, core-parallel Pallas kernel) ----
    rec_loss, aux_loss, kl_loss = elbo_reduce(x_target, x_out, auxpi_out,
                                              auxal_out, mu_pi, logvar_pi)

    # ---- all three MI estimators + reparameterization in ONE kernel ----
    flat = lambda a: a.reshape(B, -1).astype(f32)
    packed = pack_mi_params(params)
    stats = mi_fused(flat(mu_pi), flat(logvar_pi), flat(noise_elbo),
                     flat(noise_rodi), flat(z_al), packed)
    mi_e, mi_e_loss, mi_e_acc = stats[0, 0], stats[1, 0], stats[2, 0]
    mi1, mi1_loss, mi1_acc = stats[0, 1], stats[1, 1], stats[2, 1]
    mi2, mi2_loss, mi2_acc = stats[0, 2], stats[1, 2], stats[2, 2]

    loss = rec_loss + gamma * kl_loss + aux_loss

    # ---- RoDi MI constraint ----
    constraint = mi1 - EPS_C
    active = (MU_C * constraint + lambda_ >= 0).astype(f32)
    warm = (jnp.asarray(global_step) >= WARMUP_IT).astype(f32)
    loss_mi = warm * active * (lambda_ * constraint + 0.5 * MU_C * constraint ** 2)
    loss = loss + loss_mi

    # avg_mi registered buffers are zero-initialized
    avg_mi1 = jnp.float32(0.0)
    avg_mi2 = jnp.float32(0.0)
    mi_diff = avg_mi2 - avg_mi1 - B_GAMMA

    scalars = {
        "loss": loss, "rec_loss": rec_loss, "aux_loss": aux_loss,
        "kl_loss": kl_loss, "loss_mi": loss_mi, "constraint": constraint,
        "lambda_": lambda_, "gamma": gamma, "mi_diff": mi_diff,
        "mi_mi": mi_e, "mi_loss": mi_e_loss, "mi_acc": mi_e_acc,
        "mi1_mi": mi1, "mi1_loss": mi1_loss, "mi1_acc": mi1_acc,
        "mi2_mi": mi2, "mi2_loss": mi2_loss, "mi2_acc": mi2_acc,
    }
    return loss, scalars


# ---------------------------------------------------------------------------
# deterministic parameter init for the (synthesized) MI estimators
# ---------------------------------------------------------------------------
def make_mi_params(key, D, H=32):
    k1, k2, k3, k4 = jax.random.split(key, 4)
    s = 0.05
    return dict(
        w1p=jax.random.normal(k1, (D, H), jnp.float32) * s,
        w1a=jax.random.normal(k2, (D, H), jnp.float32) * s,
        b1=jnp.zeros((1, H), jnp.float32),
        w2=jax.random.normal(k3, (H, H), jnp.float32) * s,
        b2=jnp.zeros((1, H), jnp.float32),
        w3=jax.random.normal(k4, (H, 1), jnp.float32) * s,
        b3=jnp.zeros((1, 1), jnp.float32),
    )


if __name__ == "__main__":
    key = jax.random.PRNGKey(0)
    keys = jax.random.split(key, 12)

    B, C, H, W = 2, 4, 16, 16         # image tensors  [B, C, H, W]
    Cz, Hz, Wz = 4, 8, 8              # latent tensors [B, Cz, Hz, Wz]
    D = Cz * Hz * Wz                  # flattened latent dim = 256

    x_target = jax.random.normal(keys[0], (B, C, H, W), jnp.float32)
    x_out = jax.random.normal(keys[1], (B, C, H, W), jnp.float32)
    auxpi_out = jax.random.normal(keys[2], (B, C, H, W), jnp.float32)
    auxal_out = jax.random.normal(keys[3], (B, C, H, W), jnp.float32)
    mu_pi = jax.random.normal(keys[4], (B, Cz, Hz, Wz), jnp.float32)
    logvar_pi = 0.1 * jax.random.normal(keys[5], (B, Cz, Hz, Wz), jnp.float32)
    z_al = jax.random.normal(keys[6], (B, Cz, Hz, Wz), jnp.float32)
    noise_elbo = jax.random.normal(keys[7], (B, Cz, Hz, Wz), jnp.float32)
    noise_rodi = jax.random.normal(keys[8], (B, Cz, Hz, Wz), jnp.float32)

    params = dict(
        mi=make_mi_params(keys[9], D),
        mi1=make_mi_params(keys[10], D),
        mi2=make_mi_params(keys[11], D),
    )
    gamma = jnp.float32(GAMMA_INIT)
    lambda_ = jnp.float32(LAMBDA_INIT)
    global_step = 1500                # past warmup_it so the MI penalty is live

    loss, scalars = rodi_forward(x_target, x_out, mu_pi, logvar_pi, z_al,
                                 auxpi_out, auxal_out, global_step, params,
                                 noise_elbo, noise_rodi, gamma, lambda_)
    jax.block_until_ready(loss)
    jax.block_until_ready(scalars)
    print("KERNEL_OK")
</pallas_src>

<mosaic_0001>
module attributes {stable_mosaic.version = 11 : i64} {
  func.func @elbo_kernel(%arg0: i32, %arg1: i32, %arg2: memref<8x128xf32, #tpu.memory_space<vmem>>, %arg3: memref<8x128xf32, #tpu.memory_space<vmem>>, %arg4: memref<8x128xf32, #tpu.memory_space<vmem>>, %arg5: memref<8x128xf32, #tpu.memory_space<vmem>>, %arg6: memref<8x128xf32, #tpu.memory_space<vmem>>, %arg7: memref<8x128xf32, #tpu.memory_space<vmem>>, %arg8: memref<8x128xf32, #tpu.memory_space<vmem>>, %arg9: memref<1x128xf32, #tpu.memory_space<vmem>>, %arg10: memref<1x128xf32, #tpu.memory_space<vmem>>) attributes {dimension_semantics = [#tpu.dimension_semantics<parallel>, #tpu.dimension_semantics<arbitrary>], iteration_bounds = array<i64: 2, 1>, scalar_prefetch = 0 : i64, scratch_operands = 2 : i64, tpu.core_type = #tpu.core_type<tc>, window_params = [{transform_indices = @transform_0, window_bounds = array<i64: 8, 128>}, {transform_indices = @transform_1, window_bounds = array<i64: 8, 128>}, {transform_indices = @transform_2, window_bounds = array<i64: 8, 128>}, {transform_indices = @transform_3, window_bounds = array<i64: 8, 128>}, {pipeline_mode = #tpu.pipeline_mode<synchronous>, transform_indices = @transform_4, window_bounds = array<i64: 8, 128>}, {pipeline_mode = #tpu.pipeline_mode<synchronous>, transform_indices = @transform_5, window_bounds = array<i64: 8, 128>}, {transform_indices = @transform_6, window_bounds = array<i64: 8, 128>}]} {
    %c0_i32 = arith.constant 0 : i32
    %0 = arith.cmpi eq, %arg1, %c0_i32 : i32
    %1 = arith.extui %0 : i1 to i32
    %c0_i32_0 = arith.constant 0 : i32
    %2 = arith.cmpi ne, %1, %c0_i32_0 : i32
    scf.if %2 {
      %cst_20 = arith.constant 0.000000e+00 : f32
      %29 = vector.broadcast %cst_20 : f32 to vector<1x128xf32>
      %c0_21 = arith.constant 0 : index
      %c0_22 = arith.constant 0 : index
      %30 = vector.load %arg9[%c0_21, %c0_22] : memref<1x128xf32, #tpu.memory_space<vmem>>, vector<1x128xf32>
      tpu.vector_store %arg9[%c0_21, %c0_22], %29 {strides = array<i32>} : memref<1x128xf32, #tpu.memory_space<vmem>>, vector<1x128xf32>,
      %cst_23 = arith.constant 0.000000e+00 : f32
      %31 = vector.broadcast %cst_23 : f32 to vector<1x128xf32>
      %c0_24 = arith.constant 0 : index
      %c0_25 = arith.constant 0 : index
      %32 = vector.load %arg10[%c0_24, %c0_25] : memref<1x128xf32, #tpu.memory_space<vmem>>, vector<1x128xf32>
      tpu.vector_store %arg10[%c0_24, %c0_25], %31 {strides = array<i32>} : memref<1x128xf32, #tpu.memory_space<vmem>>, vector<1x128xf32>,
    } else {
    }
    %c0 = arith.constant 0 : index
    %c0_1 = arith.constant 0 : index
    %3 = vector.load %arg2[%c0, %c0_1] : memref<8x128xf32, #tpu.memory_space<vmem>>, vector<8x128xf32>
    %c0_2 = arith.constant 0 : index
    %c0_3 = arith.constant 0 : index
    %4 = vector.load %arg3[%c0_2, %c0_3] : memref<8x128xf32, #tpu.memory_space<vmem>>, vector<8x128xf32>
    %5 = arith.subf %3, %4 : vector<8x128xf32>
    %c0_4 = arith.constant 0 : index
    %c0_5 = arith.constant 0 : index
    %6 = vector.load %arg9[%c0_4, %c0_5] : memref<1x128xf32, #tpu.memory_space<vmem>>, vector<1x128xf32>
    %7 = arith.mulf %5, %5 : vector<8x128xf32>
    %cst = arith.constant dense<0.000000e+00> : vector<128xf32>
    %8 = vector.multi_reduction <add>, %7, %cst [0] : vector<8x128xf32> to vector<128xf32>
    %9 = vector.shape_cast %8 : vector<128xf32> to vector<1x128xf32>
    %10 = arith.addf %6, %9 : vector<1x128xf32>
    %c0_6 = arith.constant 0 : index
    %c0_7 = arith.constant 0 : index
    %11 = vector.load %arg9[%c0_6, %c0_7] : memref<1x128xf32, #tpu.memory_space<vmem>>, vector<1x128xf32>
    tpu.vector_store %arg9[%c0_6, %c0_7], %10 {strides = array<i32>} : memref<1x128xf32, #tpu.memory_space<vmem>>, vector<1x128xf32>,
    %c0_8 = arith.constant 0 : index
    %c0_9 = arith.constant 0 : index
    %12 = vector.load %arg4[%c0_8, %c0_9] : memref<8x128xf32, #tpu.memory_space<vmem>>, vector<8x128xf32>
    %13 = arith.subf %3, %12 : vector<8x128xf32>
    %c0_10 = arith.constant 0 : index
    %c0_11 = arith.constant 0 : index
    %14 = vector.load %arg5[%c0_10, %c0_11] : memref<8x128xf32, #tpu.memory_space<vmem>>, vector<8x128xf32>
    %15 = arith.subf %3, %14 : vector<8x128xf32>
    %c0_12 = arith.constant 0 : index
    %c0_13 = arith.constant 0 : index
    %16 = vector.load %arg10[%c0_12, %c0_13] : memref<1x128xf32, #tpu.memory_space<vmem>>, vector<1x128xf32>
    %17 = arith.mulf %13, %13 : vector<8x128xf32>
    %18 = arith.mulf %15, %15 : vector<8x128xf32>
    %19 = arith.addf %17, %18 : vector<8x128xf32>
    %cst_14 = arith.constant 5.000000e-01 : f32
    %20 = vector.broadcast %cst_14 : f32 to vector<8x128xf32>
    %21 = arith.mulf %20, %19 : vector<8x128xf32>
    %cst_15 = arith.constant dense<0.000000e+00> : vector<128xf32>
    %22 = vector.multi_reduction <add>, %21, %cst_15 [0] : vector<8x128xf32> to vector<128xf32>
    %23 = vector.shape_cast %22 : vector<128xf32> to vector<1x128xf32>
    %24 = arith.addf %16, %23 : vector<1x128xf32>
    %c0_16 = arith.constant 0 : index
    %c0_17 = arith.constant 0 : index
    %25 = vector.load %arg10[%c0_16, %c0_17] : memref<1x128xf32, #tpu.memory_space<vmem>>, vector<1x128xf32>
    tpu.vector_store %arg10[%c0_16, %c0_17], %24 {strides = array<i32>} : memref<1x128xf32, #tpu.memory_space<vmem>>, vector<1x128xf32>,
    %c0_i32_18 = arith.constant 0 : i32
    %26 = arith.cmpi eq, %arg1, %c0_i32_18 : i32
    %27 = arith.extui %26 : i1 to i32
    %c0_i32_19 = arith.constant 0 : i32
    %28 = arith.cmpi ne, %27, %c0_i32_19 : i32
    scf.if %28 {
      %c0_20 = arith.constant 0 : index
      %c0_21 = arith.constant 0 : index
      %29 = vector.load %arg6[%c0_20, %c0_21] : memref<8x128xf32, #tpu.memory_space<vmem>>, vector<8x128xf32>
      %c0_22 = arith.constant 0 : index
      %c0_23 = arith.constant 0 : index
      %30 = vector.load %arg7[%c0_22, %c0_23] : memref<8x128xf32, #tpu.memory_space<vmem>>, vector<8x128xf32>
      %c0_i32_24 = arith.constant 0 : i32
      %31 = arith.cmpi eq, %arg0, %c0_i32_24 : i32
      %32 = arith.extui %31 : i1 to i32
      %33 = arith.sitofp %32 : i32 to f32
      %34 = arith.mulf %29, %29 : vector<8x128xf32>
      %35 = math.exp %30 : vector<8x128xf32>
      %36 = arith.addf %34, %35 : vector<8x128xf32>
      %cst_25 = arith.constant 1.000000e+00 : f32
      %37 = vector.broadcast %cst_25 : f32 to vector<8x128xf32>
      %38 = arith.subf %36, %37 : vector<8x128xf32>
      %39 = arith.subf %38, %30 : vector<8x128xf32>
      %cst_26 = arith.constant 5.000000e-01 : f32
      %40 = vector.broadcast %cst_26 : f32 to vector<8x128xf32>
      %41 = arith.mulf %40, %39 : vector<8x128xf32>
      %42 = vector.shape_cast %41 : vector<8x128xf32> to vector<1x8x128xf32>
      %cst_27 = arith.constant dense<0.000000e+00> : vector<1xf32>
      %43 = vector.multi_reduction <add>, %42, %cst_27 [1, 2] : vector<1x8x128xf32> to vector<1xf32>
      %44 = vector.shape_cast %43 : vector<1xf32> to vector<1x1x1xf32>
      %45 = vector.extract %44[0, 0, 0] : f32 from vector<1x1x1xf32>
      %46 = vector.broadcast %45 : f32 to vector<1x1xf32>
      %47 = vector.broadcast %33 : f32 to vector<1x1xf32>
      %48 = arith.mulf %47, %46 : vector<1x1xf32>
      %c0_28 = arith.constant 0 : index
      %c0_29 = arith.constant 0 : index
      %49 = vector.load %arg9[%c0_28, %c0_29] : memref<1x128xf32, #tpu.memory_space<vmem>>, vector<1x128xf32>
      %50 = vector.shape_cast %49 : vector<1x128xf32> to vector<1x1x128xf32>
      %cst_30 = arith.constant dense<0.000000e+00> : vector<1xf32>
      %51 = vector.multi_reduction <add>, %50, %cst_30 [1, 2] : vector<1x1x128xf32> to vector<1xf32>
      %52 = vector.shape_cast %51 : vector<1xf32> to vector<1x1x1xf32>
      %53 = vector.extract %52[0, 0, 0] : f32 from vector<1x1x1xf32>
      %54 = vector.broadcast %53 : f32 to vector<1x1xf32>
      %c0_31 = arith.constant 0 : index
      %c0_32 = arith.constant 0 : index
      %55 = vector.load %arg10[%c0_31, %c0_32] : memref<1x128xf32, #tpu.memory_space<vmem>>, vector<1x128xf32>
      %56 = vector.shape_cast %55 : vector<1x128xf32> to vector<1x1x128xf32>
      %cst_33 = arith.constant dense<0.000000e+00> : vector<1xf32>
      %57 = vector.multi_reduction <add>, %56, %cst_33 [1, 2] : vector<1x1x128xf32> to vector<1xf32>
      %58 = vector.shape_cast %57 : vector<1xf32> to vector<1x1x1xf32>
      %59 = vector.extract %58[0, 0, 0] : f32 from vector<1x1x1xf32>
      %60 = vector.broadcast %59 : f32 to vector<1x1xf32>
      %61 = tpu.iota {dimensions = array<i32: 0>} : vector<8x128xi32>
      %62 = tpu.iota {dimensions = array<i32: 1>} : vector<8x128xi32>
      %c0_i32_34 = arith.constant 0 : i32
      %63 = vector.broadcast %c0_i32_34 : i32 to vector<8x128xi32>
      %64 = arith.cmpi eq, %61, %63 : vector<8x128xi32>
      %65 = arith.extui %64 : vector<8x128xi1> to vector<8x128xi32>
      %66 = arith.sitofp %65 : vector<8x128xi32> to vector<8x128xf32>
      %c0_i32_35 = arith.constant 0 : i32
      %67 = vector.broadcast %c0_i32_35 : i32 to vector<8x128xi32>
      %68 = arith.cmpi eq, %62, %67 : vector<8x128xi32>
      %69 = arith.extui %68 : vector<8x128xi1> to vector<8x128xi32>
      %70 = arith.sitofp %69 : vector<8x128xi32> to vector<8x128xf32>
      %71 = vector.broadcast %54 : vector<1x1xf32> to vector<8x128xf32>
      %72 = arith.mulf %71, %70 : vector<8x128xf32>
      %c1_i32 = arith.constant 1 : i32
      %73 = vector.broadcast %c1_i32 : i32 to vector<8x128xi32>
      %74 = arith.cmpi eq, %62, %73 : vector<8x128xi32>
      %75 = arith.extui %74 : vector<8x128xi1> to vector<8x128xi32>
      %76 = arith.sitofp %75 : vector<8x128xi32> to vector<8x128xf32>
      %77 = vector.broadcast %60 : vector<1x1xf32> to vector<8x128xf32>
      %78 = arith.mulf %77, %76 : vector<8x128xf32>
      %79 = arith.addf %72, %78 : vector<8x128xf32>
      %c2_i32 = arith.constant 2 : i32
      %80 = vector.broadcast %c2_i32 : i32 to vector<8x128xi32>
      %81 = arith.cmpi eq, %62, %80 : vector<8x128xi32>
      %82 = arith.extui %81 : vector<8x128xi1> to vector<8x128xi32>
      %83 = arith.sitofp %82 : vector<8x128xi32> to vector<8x128xf32>
      %84 = vector.broadcast %48 : vector<1x1xf32> to vector<8x128xf32>
      %85 = arith.mulf %84, %83 : vector<8x128xf32>
      %86 = arith.addf %79, %85 : vector<8x128xf32>
      %87 = arith.mulf %66, %86 : vector<8x128xf32>
      %c0_36 = arith.constant 0 : index
      %c0_37 = arith.constant 0 : index
      %88 = vector.load %arg8[%c0_36, %c0_37] : memref<8x128xf32, #tpu.memory_space<vmem>>, vector<8x128xf32>
      tpu.vector_store %arg8[%c0_36, %c0_37], %87 {strides = array<i32>} : memref<8x128xf32, #tpu.memory_space<vmem>>, vector<8x128xf32>,
    } else {
    }
    return
  }
  func.func @transform_0(%arg0: i32, %arg1: i32) -> (i32, i32) {
    %c1_i32 = arith.constant 1 : i32
    %0 = arith.muli %arg0, %c1_i32 : i32
    %1 = arith.addi %0, %arg1 : i32
    %c0_i32 = arith.constant 0 : i32
    %c0_i32_0 = arith.constant 0 : i32
    return %1, %c0_i32 : i32, i32
  }
  func.func @transform_1(%arg0: i32, %arg1: i32) -> (i32, i32) {
    %c1_i32 = arith.constant 1 : i32
    %0 = arith.muli %arg0, %c1_i32 : i32
    %1 = arith.addi %0, %arg1 : i32
    %c0_i32 = arith.constant 0 : i32
    %c0_i32_0 = arith.constant 0 : i32
    return %1, %c0_i32 : i32, i32
  }
  func.func @transform_2(%arg0: i32, %arg1: i32) -> (i32, i32) {
    %c1_i32 = arith.constant 1 : i32
    %0 = arith.muli %arg0, %c1_i32 : i32
    %1 = arith.addi %0, %arg1 : i32
    %c0_i32 = arith.constant 0 : i32
    %c0_i32_0 = arith.constant 0 : i32
    return %1, %c0_i32 : i32, i32
  }
  func.func @transform_3(%arg0: i32, %arg1: i32) -> (i32, i32) {
    %c1_i32 = arith.constant 1 : i32
    %0 = arith.muli %arg0, %c1_i32 : i32
    %1 = arith.addi %0, %arg1 : i32
    %c0_i32 = arith.constant 0 : i32
    %c0_i32_0 = arith.constant 0 : i32
    return %1, %c0_i32 : i32, i32
  }
  func.func @transform_4(%arg0: i32, %arg1: i32) -> (i32, i32) {
    %c0_i32 = arith.constant 0 : i32
    %c0_i32_0 = arith.constant 0 : i32
    %c0_i32_1 = arith.constant 0 : i32
    return %c0_i32, %c0_i32_0 : i32, i32
  }
  func.func @transform_5(%arg0: i32, %arg1: i32) -> (i32, i32) {
    %c0_i32 = arith.constant 0 : i32
    %c0_i32_0 = arith.constant 0 : i32
    %c0_i32_1 = arith.constant 0 : i32
    return %c0_i32, %c0_i32_0 : i32, i32
  }
  func.func @transform_6(%arg0: i32, %arg1: i32) -> (i32, i32) {
    %c0_i32 = arith.constant 0 : i32
    %c0_i32_0 = arith.constant 0 : i32
    return %arg0, %c0_i32 : i32, i32
  }
}

</mosaic_0001>

<bundles_post_ra>
// kernel: tpu_custom_call.1
= control target key start
LH: loop header
LB: loop body
LE: loop exit
PB: predicated region body
PF: predicated region fallthrough
CT: control target
= control target key end

     0   :  { %s1350_s0 = inlined_call_operand.hbm [shape: f32[16,128], index: 0, kind: input, shape index: {}]   ;;  %s1351_s1 = inlined_call_operand.hbm [shape: f32[16,128], index: 1, kind: input, shape index: {}]   ;;  %s1352_s2 = inlined_call_operand.hbm [shape: f32[16,128], index: 2, kind: input, shape index: {}]   ;;  %s1353_s3 = inlined_call_operand.hbm [shape: f32[16,128], index: 3, kind: input, shape index: {}]   ;;  %s1354_s4 = inlined_call_operand.vmem [shape: f32[8,128], index: 4, kind: input, shape index: {}]   ;;  %s1355_s5 = inlined_call_operand.vmem [shape: f32[8,128], index: 5, kind: input, shape index: {}]   ;;  %s1356_s6 = inlined_call_operand.hbm [shape: f32[16,128], index: 6, kind: output, shape index: {}]  }
   0x1   :  { %1368 = sst [smem:[#allocation24_spill]] %s1351_s1 }
   0x2   :  { %11 = vsyncpa [#allocation5], 0 }
   0x3   :  { %13 = vsyncpa [#allocation5 + $0x1], 0 }
   0x4   :  { %14 = vsyncpa [#allocation8], 0 }
   0x5   :  { %16 = vsyncpa [#allocation8 + $0x1], 0 }
   0x6   :  { %17 = vsyncpa [#allocation11], 0 }
   0x7   :  { %19 = vsyncpa [#allocation11 + $0x1], 0 }
   0x8   :  { %20 = vsyncpa [#allocation6], 0 }
   0x9   :  { %22 = vsyncpa [#allocation6 + $0x1], 0  ;;  %s1042_s21 = smov 0   ;;  %s1044_s22 = smov 0  }
   0xa   :  { %s1046_s23 = smov 0   ;;  %s1048_s24 = smov 0  }
   0xb   :  { %s1050_s25 = smov 0   ;;  %s1052_s26 = smov 0  }
   0xc LB: > { %1369 = sst [smem:[#allocation17_spill]] %s979_s21  ;;  %s1073_s27 = sadd.s32 4294967295, %s999_s26   ;;  %s999_s26 = sphi %s1052_s26, %s28_s26   ;;  %s995_s25 = sphi %s1050_s25, %s1399_s25   ;;  %s991_s24 = sphi %s1048_s24, %s1398_s24   ;;  %s987_s23 = sphi %s1046_s23, %s1397_s23   ;;  %s983_s22 = sphi %s1044_s22, %s1401_s22   ;;  %s979_s21 = sphi %s1042_s21, %s1400_s21  }
   0xd   : > { %1370 = sst [smem:[#allocation18_spill]] %s987_s23  ;;  %s677_s28 = sadd.s32 4294967294, %s999_s26  }
   0xe   : > { %1371 = sst [smem:[#allocation19_spill]] %s995_s25  ;;  %s40_s29 = sadd.s32 1, %s995_s25 }
   0xf   : > { %1372 = sst [smem:[#allocation20_spill]] %s999_s26  ;;  %s49_s30 = sadd.s32 1, %s987_s23 }
  0x10   : > { %p42_p0 = scmp.ge.s32.totalorder %s40_s29, 2  ;;  %p56_p1 = scmp.ne.s32.totalorder %s987_s23, %s983_s22 }
  0x11   : > { %p57_p2 = scmp.eq.s32.totalorder %s999_s26, 0  ;;  %p62_p3 = scmp.ne.s32.totalorder %s983_s22, %s979_s21 }
  0x12   : > { %s1403_s29 = smov (%p42_p0, %s40_s29), 0  ;;  %p63_p5 = scmp.eq.s32.totalorder %s1073_s27, 0 }
  0x13   : > { %1373 = sst [smem:[#allocation21_spill]] %s1403_s29  ;;  %p1085_p4 = por %p57_p2, %p56_p1 }
  0x14   : > { %s46_s8 = ssub.s32 %s995_s25, %s1403_s29  ;;  %p212_p6 = scmp.eq.s32.totalorder %s1073_s27, 1 }
  0x15   : > { %p47_p7 = scmp.eq.s32.totalorder %s46_s8, 0  ;;  %p1093_p8 = por %p63_p5, %p62_p3 }
  0x16   : > { %p1097_p9 = por %p212_p6, %p56_p1  ;;  %p218_p10 = scmp.eq.s32.totalorder %s677_s28, 1 }
  0x17   : > { %s1375_s9 = scalar_select %p1093_p8, 1, 0 }
  0x18   : > { %s1376_s10 = scalar_select %p1097_p9, 1, 0 }
  0x19   : > { %s1102_s11 = scalar_select %p47_p7, %s987_s23, %s49_s30  }
  0x1a   : > { %p1104_p11 = por %p218_p10, %p62_p3  ;;  %p736_p13 = scmp.lt.s32.totalorder %s999_s26, 2 }
  0x1b   : > { %1377 = sst [smem:[#allocation22_spill]] %s1102_s11  ;;  %s1111_s13 = sand.u32 1, %s987_s23  }
  0x1c   : > { %s1378_s12 = scalar_select %p1104_p11, 1, 0 }
  0x1d   : > { %s1114_s14 = sshll.u32 %s1111_s13, 3  ;;  %s1117_s15 = sshll.u32 %s995_s25, 7 }
  0x1e   : > { %1379 = sst [smem:[#allocation23_spill]] %s1378_s12  ;;  %p1121_p0 = pnand %p736_p13, %p1085_p4 }
  0x1f   : > { %s263_s17 = sand.u32 1, %s999_s26   ;;  %s1381_s1 = sld [smem:[#allocation24_spill]] }
  0x20   : > { %s1380_s16 = scalar_select %p1121_p0, 1, 0 }
  0x21   : > { %s267_s28 = scalar_lea.vmem [#allocation7], %s1114_s14  ;;  %s1137_s7 = scalar_lea.sflag [#allocation8], %s263_s17 }
  0x22   : > { %s275_s30 = sshll.u32 %s267_s28, 4  ;;  %p1143_p4 = pneg %p1121_p0  ;;  %s1134_s30 = int_to_ptr.vmem [resolvable:$true] %s275_s30 }
  0x25   : > { %s1130_s20 = scalar_lea.hbm %s1381_s1, %s1117_s15  ;;  %s794_s28 = scalar_lea.hbm %s1381_s1, 256 }
  0x26   : > { %s789_s8 = scalar_lea.hbm %s1130_s20, 128  ;;  %p795_p7 = scmp.lt.u32.totalorder %s1130_s20, %s1381_s1 }
  0x27   : > { %p790_p3 = scmp.ne.s32.totalorder %s1130_s20, %s789_s8  ;;  %p796_p10 = scmp.lt.u32.totalorder %s794_s28, %s789_s8 }
  0x28   : > { %p798_p12 = scmp.lt.u32.totalorder %s789_s8, %s1130_s20 }
  0x29   : > { %p792_p5 = pnand %p1143_p4, %p790_p3  ;;  %p797_p13 = por %p796_p10, %p795_p7 }
  0x2b   : > { %p793_p6 = pneg %p792_p5  ;;  %p799_p1 = por %p798_p12, %p797_p13 }
  0x2d   : > { %p800_p2 = pnand %p799_p1, %p793_p6 }
  0x2f   : > { %803 = shalt.err (!%p800_p2)
}
  0x30   : > { %s804_s17 = scalar_lea.vmem %s1134_s30, 128  ;;  %s1001_s18 = smov [#allocation7]  }
  0x31   : > { %p805_p3 = scmp.ne.s32.totalorder %s1134_s30, %s804_s17  ;;  %s809_s19 = sshll.u32 %s1001_s18, 4  ;;  %s810_s19 = int_to_ptr.vmem [resolvable:$false] %s809_s19 }
  0x32   : > { %s811_s25 = scalar_lea.vmem %s810_s19, 256  ;;  %p812_p9 = scmp.lt.s32.totalorder %s1134_s30, %s810_s19 }
  0x33   : > { %p807_p5 = pnand %p805_p3, %p1143_p4  ;;  %p813_p8 = scmp.lt.s32.totalorder %s811_s25, %s804_s17 }
  0x35   : > { %p808_p11 = pneg %p807_p5  ;;  %p814_p7 = por %p813_p8, %p812_p9 }
  0x37   : > { %p815_p10 = pnand %p814_p7, %p808_p11 }
  0x39   : > { %818 = shalt.err (!%p815_p10)
}
  0x3a   : > { %725 = dma.hbm_to_vmem [thread:$0]  (!%p1121_p0), %s1130_s20, 128, %s1134_s30, %s1137_s7  }
  0x3b   : > { %p1383_p12 = scmp.lt.s32.totalorder %s999_s26, 3  ;;  %p1384_p1 = scmp.ge.s32.totalorder %s999_s26, 1 }
  0x3c   : > { %s1179_s17 = scalar_lea.hbm %s1350_s0, %s1117_s15  ;;  %s248_s18 = scalar_lea.vmem [#allocation4], %s1114_s14 }
  0x3d   : > { %p1171_p2 = pnand %p1384_p1, %p1383_p12  ;;  %s256_s19 = sshll.u32 %s248_s18, 4  ;;  %s1182_s19 = int_to_ptr.vmem [resolvable:$true] %s256_s19 }
  0x3e   : > { %s1188_s25 = scalar_lea.hbm %s1352_s2, %s1117_s15  ;;  %s245_s1 = scalar_lea.sflag [#allocation5], %s1111_s13 }
  0x3f   : > { %s1385_s11 = scalar_select %p1171_p2, 1, 0 }
  0x40   : > { %s819_s23 = scalar_lea.hbm %s1179_s17, 128  ;;  %s824_s26 = scalar_lea.hbm %s1350_s0, 256 }
  0x41   : > { %p820_p8 = scmp.ne.s32.totalorder %s1179_s17, %s819_s23  ;;  %p825_p6 = scmp.lt.u32.totalorder %s1179_s17, %s1350_s0 }
  0x42   : > { %p826_p13 = scmp.lt.u32.totalorder %s824_s26, %s819_s23  ;;  %p828_p5 = scmp.lt.u32.totalorder %s819_s23, %s1179_s17 }
  0x43   : > { %p822_p9 = pnand %p820_p8, %p1143_p4 }
  0x44   : > { %p827_p3 = por %p826_p13, %p825_p6 }
  0x45   : > { %p823_p11 = pneg %p822_p9 }
  0x46   : > { %p829_p7 = por %p828_p5, %p827_p3 }
  0x48   : > { %p830_p10 = pnand %p829_p7, %p823_p11 }
  0x4a   : > { %833 = shalt.err (!%p830_p10)
}
  0x4b   : > { %s834_s18 = scalar_lea.vmem %s1182_s19, 128  ;;  %s1002_s20 = smov [#allocation4]  }
  0x4c   : > { %p835_p12 = scmp.ne.s32.totalorder %s1182_s19, %s834_s18  ;;  %s839_s30 = sshll.u32 %s1002_s20, 4  ;;  %s840_s30 = int_to_ptr.vmem [resolvable:$false] %s839_s30 }
  0x4d   : > { %s841_s21 = scalar_lea.vmem %s840_s30, 256  ;;  %p842_p9 = scmp.lt.s32.totalorder %s1182_s19, %s840_s30 }
  0x4e   : > { %p837_p1 = pnand %p835_p12, %p1143_p4  ;;  %p843_p2 = scmp.lt.s32.totalorder %s841_s21, %s834_s18 }
  0x50   : > { %p838_p8 = pneg %p837_p1  ;;  %p844_p6 = por %p843_p2, %p842_p9 }
  0x52   : > { %p845_p13 = pnand %p844_p6, %p838_p8 }
  0x54   : > { %848 = shalt.err (!%p845_p13)
}
  0x55   : > { %722 = dma.hbm_to_vmem [thread:$0]  (!%p1121_p0), %s1179_s17, 128, %s1182_s19, %s245_s1  }
  0x56   : > { %s286_s23 = scalar_lea.vmem [#allocation9], %s1114_s14  ;;  %s849_s12 = scalar_lea.hbm %s1188_s25, 128 }
  0x57   : > { %s294_s26 = sshll.u32 %s286_s23, 4  ;;  %p850_p11 = scmp.ne.s32.totalorder %s1188_s25, %s849_s12  ;;  %s295_s26 = int_to_ptr.vmem [resolvable:$true] %s294_s26 }
  0x58   : > { %s854_s18 = scalar_lea.hbm %s1352_s2, 256  ;;  %p855_p5 = scmp.lt.u32.totalorder %s1188_s25, %s1352_s2 }
  0x59   : > { %p852_p2 = pnand %p850_p11, %p1143_p4  ;;  %p856_p7 = scmp.lt.u32.totalorder %s854_s18, %s849_s12 }
  0x5a   : > { %p858_p12 = scmp.lt.u32.totalorder %s849_s12, %s1188_s25 }
  0x5b   : > { %p853_p3 = pneg %p852_p2  ;;  %p857_p10 = por %p856_p7, %p855_p5 }
  0x5d   : > { %p859_p1 = por %p858_p12, %p857_p10 }
  0x5f   : > { %p860_p8 = pnand %p859_p1, %p853_p3 }
  0x61   : > { %863 = shalt.err (!%p860_p8)
}
  0x62   : > { %s864_s1 = scalar_lea.vmem %s295_s26, 128  ;;  %s1003_s17 = smov [#allocation9]  }
  0x63   : > { %p865_p9 = scmp.ne.s32.totalorder %s295_s26, %s864_s1  ;;  %s869_s19 = sshll.u32 %s1003_s17, 4  ;;  %s870_s19 = int_to_ptr.vmem [resolvable:$false] %s869_s19 }
  0x64   : > { %s871_s21 = scalar_lea.vmem %s870_s19, 256  ;;  %p872_p11 = scmp.lt.s32.totalorder %s295_s26, %s870_s19 }
  0x65   : > { %p867_p6 = pnand %p865_p9, %p1143_p4  ;;  %p873_p2 = scmp.lt.s32.totalorder %s871_s21, %s864_s1 }
  0x67   : > { %p868_p13 = pneg %p867_p6  ;;  %p874_p0 = por %p873_p2, %p872_p11 }
  0x69   : > { %p875_p5 = pnand %p874_p0, %p868_p13 }
  0x6b   : > { %878 = shalt.err (!%p875_p5)
}
  0x6c   : > { %p1386_p7 = scmp.ne.s32.totalorder %s1380_s16, 0  ;;  %s1235_s8 = scalar_lea.hbm %s1353_s3, %s1117_s15 }
  0x6d   : > { %s305_s28 = scalar_lea.vmem [#allocation10], %s1114_s14  ;;  %s302_s20 = scalar_lea.sflag [#allocation11], %s1111_s13 }
  0x6e   : > { %728 = dma.hbm_to_vmem [thread:$0]  (!%p1386_p7), %s1188_s25, 128, %s295_s26, %s1137_s7  }
  0x6f   : > { %s313_s18 = sshll.u32 %s305_s28, 4  ;;  %s879_s30 = scalar_lea.hbm %s1235_s8, 128  ;;  %s314_s18 = int_to_ptr.vmem [resolvable:$true] %s313_s18 }
  0x70   : > { %p880_p0 = scmp.ne.s32.totalorder %s1235_s8, %s879_s30  ;;  %s884_s25 = scalar_lea.hbm %s1353_s3, 256 }
  0x71   : > { %p885_p12 = scmp.lt.u32.totalorder %s1235_s8, %s1353_s3  ;;  %p886_p1 = scmp.lt.u32.totalorder %s884_s25, %s879_s30 }
  0x72   : > { %p882_p3 = pnand %p880_p0, %p1143_p4  ;;  %p888_p9 = scmp.lt.u32.totalorder %s879_s30, %s1235_s8 }
  0x73   : > { %p887_p8 = por %p886_p1, %p885_p12 }
  0x74   : > { %p883_p10 = pneg %p882_p3 }
  0x75   : > { %p889_p6 = por %p888_p9, %p887_p8 }
  0x77   : > { %p890_p13 = pnand %p889_p6, %p883_p10 }
  0x79   : > { %893 = shalt.err (!%p890_p13)
}
  0x7a   : > { %s894_s13 = scalar_lea.vmem %s314_s18, 128  ;;  %s1004_s14 = smov [#allocation10]  }
  0x7b   : > { %p895_p11 = scmp.ne.s32.totalorder %s314_s18, %s894_s13  ;;  %s899_s17 = sshll.u32 %s1004_s14, 4  ;;  %s900_s17 = int_to_ptr.vmem [resolvable:$false] %s899_s17 }
  0x7c   : > { %s901_s19 = scalar_lea.vmem %s900_s17, 256  ;;  %p902_p0 = scmp.lt.s32.totalorder %s314_s18, %s900_s17 }
  0x7d   : > { %p897_p2 = pnand %p895_p11, %p1143_p4  ;;  %p903_p3 = scmp.lt.s32.totalorder %s901_s19, %s894_s13 }
  0x7f   : > { %p898_p5 = pneg %p897_p2  ;;  %p904_p7 = por %p903_p3, %p902_p0 }
  0x81   : > { %p905_p1 = pnand %p904_p7, %p898_p5 }
  0x83   : > { %908 = shalt.err (!%p905_p1)
}
  0x84   : > { %p1387_p12 = scmp.ne.s32.totalorder %s1380_s16, 0  ;;  %p1388_p10 = scmp.ne.s32.totalorder %s1385_s11, 0 }
  0x85   : > { %s1259_s29 = sand.u32 (!%p1388_p10), 1, %s983_s22   ;;  %p1389_p4 = scmp.ne.s32.totalorder (!%p1388_p10), %s1375_s9, 0 }
  0x86   : > { %731 = dma.hbm_to_vmem [thread:$0]  (!%p1387_p12), %s1235_s8, 128, %s314_s18, %s302_s20  }
  0x87   : > { %322 = sbr.rel (%p1388_p10) target bundleno = 410 (0x19a), region = 44  ;;  %s1262_s21 = sshll.u32 (!%p1388_p10), %s1259_s29, 3 }
  0x88   : > { %s325_s23 = scalar_lea.sflag (!%p1388_p10), [#allocation5], %s1259_s29  ;;  %s328_s12 = scalar_lea.vmem (!%p1388_p10), [#allocation4], %s1262_s21 }
  0x8e   : > { %962 = dma.done.wait (%p1389_p4), %s325_s23, 128  }
  0x8f   : > { %964 = vsyncadd (%p1389_p4), %s325_s23, 4294967168  ;;  %s333_s16 = sand.u32 1, %s1073_s27   ;;  %s337_s8 = scalar_lea.vmem [#allocation7], %s1262_s21 }
  0x90   : > { %s334_s11 = scalar_lea.sflag [#allocation8], %s333_s16 }
  0x91   : > { %966 = dma.done.wait (%p1389_p4), %s334_s11, 256  }
  0x92   : > { %968 = vsyncadd (%p1389_p4), %s334_s11, 4294967040  ;;  %s346_s28 = scalar_lea.vmem [#allocation9], %s1262_s21  ;;  %s352_s18 = scalar_lea.sflag [#allocation11], %s1259_s29 }
  0x93   : > { %s355_s20 = scalar_lea.vmem [#allocation10], %s1262_s21 }
  0x94   : > { %970 = dma.done.wait (%p1389_p4), %s352_s18, 128  }
  0x95   : > { %972 = vsyncadd (%p1389_p4), %s352_s18, 4294967168  ;;  %v1005_v0 = vmov 0.0   ;;  %v443_v1 = vld [vmem:[%s1355_s5] sm:$0xff]  ;;  %vm467_vm0 = vcmask 1040384   ;;  %p444_p7 = scmp.eq.s32.totalorder %s991_s24, 0  ;;  %v489_v63 = vlaneseq  ;;  %s700_s14 = sshll.u32 %s991_s24, 7 }
  0x96   : > { %407 = vst [vmem:[#allocation2] sm:$0x1] %v1005_v0  ;;  %408 = vst [vmem:[#allocation3] sm:$0x1] %v1005_v0  ;;  %v409_v2 = vld [vmem:[%s328_s12] sm:$0xff]  ;;  %v410_v4 = vld [vmem:[%s337_s8] sm:$0xff]  ;;  %s1301_s16 = scalar_lea.hbm %s1356_s6, %s700_s14 }
  0x97   : > { %v448_v3 = vmul.f32 1.442695, %v443_v1  ;;  %v422_v5 = vld [vmem:[%s346_s28] sm:$0xff]  ;;  %v411_v6 = vsub.f32 %v409_v2, %v410_v4  ;;  %v424_v8 = vld [vmem:[%s355_s20] sm:$0xff]  ;;  %s445_s7 = scalar_select %p444_p7, 1, 0 }
  0x98   : > { %v423_v7 = vsub.f32 %v409_v2, %v422_v5  ;;  %v425_v9 = vsub.f32 %v409_v2, %v424_v8  ;;  %v442_v14 = vld [vmem:[%s1354_s4] sm:$0xff]  ;;  %v490_v4 = vshrl.u32 %v489_v63, 7  ;;  %s398_s17 = scalar_lea.vmem [#allocation12], %s1262_s21  ;;  %s515_s11 = scalar_lea.sflag [#allocation6], %s1259_s29 }
  0x99   : > { %787 = vpow2.f32 %v448_v3  ;;  %v413_v10 = vmul.f32 %v411_v6, %v411_v6  ;;  %v447_v18 = vmul.f32 %v442_v14, %v442_v14  ;;  %s446_s25 = scvt.s32.f32 %s445_s7  ;;  %s528_s19 = sshll.u32 %s398_s17, 4  ;;  %s1303_s19 = int_to_ptr.vmem [resolvable:$true] %s528_s19 }
  0x9a   : > { %v427_v11 = vmul.f32 %v423_v7, %v423_v7  ;;  %v428_v12 = vmul.f32 %v425_v9, %v425_v9  ;;  %vm493_vm4 = vcmp.eq.s32.totalorder %v490_v4, 0  ;;  %s909_s8 = scalar_lea.vmem %s1303_s19, 128  ;;  %p1390_p9 = scmp.ne.s32.totalorder %s1376_s10, 0 }
  0x9b   : > { %v414_v13 = vrot.slane %v413_v10, 4  ;;  %v464_v3 = vstv %s446_s25  ;;  %p910_p8 = scmp.ne.s32.totalorder %s1303_s19, %s909_s8  ;;  %s1006_s24 = smov [#allocation12]  }
  0x9c   : > { %v429_v15 = vadd.f32 %v428_v12, %v427_v11  ;;  %s913_s21 = sshll.u32 %s1006_s24, 4  ;;  %s914_s21 = int_to_ptr.vmem [resolvable:$false] %s913_s21 }
  0x9d   : > { %v415_v16 = vadd.f32 %v414_v13, %v413_v10  ;;  %v412_v26 = vld [vmem:[#allocation2] sm:$0x1]  ;;  %v426_v35 = vld [vmem:[#allocation3] sm:$0x1]  ;;  %p911_p6 = pnand %p910_p8, %p1390_p9  ;;  %s915_s28 = scalar_lea.vmem %s914_s21, 256 }
  0x9e   : > { %v430_v17 = vmul.f32 0.5, %v429_v15  ;;  %v695_v15 = vsel %vm493_vm4, 1.0, %v1005_v0  ;;  %p916_p11 = scmp.lt.s32.totalorder %s1303_s19, %s914_s21  ;;  %p917_p2 = scmp.lt.s32.totalorder %s915_s28, %s909_s8 }
  0x9f   : > { %v416_v19 = vrot.slane %v415_v16, 2  ;;  %p912_p13 = pneg %p911_p6 }
  0xa0   : > { %v431_v20 = vrot.slane %v430_v17, 4  ;;  %p918_p5 = por %p917_p2, %p916_p11 }
  0xa1   : > { %v417_v21 = vadd.f32 %v416_v19, %v415_v16 }
  0xa2   : > { %v432_v23 = vadd.f32 %v431_v20, %v430_v17  ;;  %p919_p0 = pnand %p918_p5, %p912_p13 }
  0xa3   : > { %v788_v22 = vpop.eup %787  ;;  %v418_v25 = vrot.slane %v417_v21, 1 }
  0xa4   : > { %v450_v24 = vadd.f32 %v788_v22, %v447_v18  ;;  %v433_v27 = vrot.slane %v432_v23, 2 }
  0xa5   : > { %v419_v29 = vadd.f32 %v418_v25, %v417_v21 }
  0xa6   : > { %v694_v28 = vadd.f32 -1.0, %v450_v24  ;;  %v434_v30 = vadd.f32 %v433_v27, %v432_v23 }
  0xa7   : > { %v420_v32 = vadd.f32 %v419_v29, %v412_v26 }
  0xa8   : > { %v452_v31 = vsub.f32 %v694_v28, %v443_v1  ;;  %v435_v33 = vrot.slane %v434_v30, 1  ;;  %v492_v1 = vand.u32 127, %v489_v63 }
  0xa9   : > { %421 = vst [vmem:[#allocation2] sm:$0x1] %v420_v32 }
  0xaa   : > { %v453_v34 = vmul.f32 0.5, %v452_v31  ;;  %v436_v36 = vadd.f32 %v435_v33, %v434_v30  ;;  %vm496_vm1 = vcmp.eq.s32.totalorder %v492_v1, 0  ;;  %vm501_vm2 = vcmp.eq.s32.totalorder %v492_v1, 1 }
  0xab   : > { %vm507_vm3 = vcmp.eq.s32.totalorder %v492_v1, 2  ;;  %v696_v5 = vsel %vm496_vm1, 1.0, %v1005_v0  ;;  %v697_v7 = vsel %vm501_vm2, 1.0, %v1005_v0 }
  0xac   : > { %454 = vadd.xlane.f32.xlu0 %v453_v34  ;;  %v437_v37 = vadd.f32 %v436_v36, %v426_v35  ;;  %v698_v9 = vsel %vm507_vm3, 1.0, %v1005_v0 }
  0xae   : > { %438 = vst [vmem:[#allocation3] sm:$0x1] %v437_v37 }
  0xb0   : > { %v466_v38 = vld [vmem:[#allocation2] sm:$0x1] }
  0xb1   : > { %v468_v39 = vsel %vm467_vm0, %v466_v38, 0.0 }
  0xb2   : > { %469 = vadd.xlane.f32.xlu0 %v468_v39 }
  0xb5   : > { %v478_v40 = vld [vmem:[#allocation3] sm:$0x1] }
  0xb6   : > { %v479_v41 = vsel %vm467_vm0, %v478_v40, 0.0 }
  0xb7   : > { %480 = vadd.xlane.f32.xlu1 %v479_v41 }
 0x139   : > { %v455_v42 = vpop.xlane.xlu0 %454 }
 0x13a   : > { %v456_v43 = vrot.slane %v455_v42, 4 }
 0x13c   : > { %v457_v44 = vadd.f32 %v456_v43, %v455_v42 }
 0x13e   : > { %v458_v45 = vrot.slane %v457_v44, 2 }
 0x13f   : > { %v470_v46 = vpop.xlane.xlu0 %469 }
 0x140   : > { %v459_v47 = vadd.f32 %v458_v45, %v457_v44  ;;  %v471_v48 = vrot.slane %v470_v46, 4 }
 0x142   : > { %v460_v49 = vrot.slane %v459_v47, 1  ;;  %v472_v50 = vadd.f32 %v471_v48, %v470_v46 }
 0x144   : > { %v461_v51 = vadd.f32 %v460_v49, %v459_v47  ;;  %v473_v52 = vrot.slane %v472_v50, 2  ;;  %v481_v53 = vpop.xlane.xlu1 %480 }
 0x145   : > { %v482_v54 = vrot.slane %v481_v53, 4 }
 0x146   : > { %703 = vpush %v461_v51  ;;  %v474_v55 = vadd.f32 %v473_v52, %v472_v50 }
 0x147   : > { %v483_v56 = vadd.f32 %v482_v54, %v481_v53 }
 0x148   : > { %v475_v57 = vrot.slane %v474_v55, 1 }
 0x149   : > { %v484_v58 = vrot.slane %v483_v56, 2 }
 0x14a   : > { %v476_v59 = vadd.f32 %v475_v57, %v474_v55 }
 0x14b   : > { %v485_v60 = vadd.f32 %v484_v58, %v483_v56 }
 0x14c   : > { %705 = vpush %v476_v59 }
 0x14d   : > { %v486_v61 = vrot.slane %v485_v60, 1 }
 0x14f   : > { %v487_v62 = vadd.f32 %v486_v61, %v485_v60 }
 0x151   : > { %707 = vpush %v487_v62 }
 0x177   : > { %s704_s26 = spop %703 }
 0x178   : > { %v463_v2 = vstv %s704_s26 }
 0x179   : > { %v465_v8 = vmul.f32 %v464_v3, %v463_v2 }
 0x17b   : > { %v510_v13 = vmul.f32 %v698_v9, %v465_v8 }
 0x17d   : > { %s706_s15 = spop %705 }
 0x17e   : > { %v499_v6 = vstv %s706_s15 }
 0x17f   : > { %v500_v11 = vmul.f32 %v696_v5, %v499_v6 }
 0x182   : > { %s708_s13 = spop %707 }
 0x183   : > { %v504_v10 = vstv %s708_s13 }
 0x184   : > { %v505_v12 = vmul.f32 %v697_v7, %v504_v10 }
 0x186   : > { %v506_v14 = vadd.f32 %v505_v12, %v500_v11 }
 0x188   : > { %v511_v16 = vadd.f32 %v510_v13, %v506_v14 }
 0x18a   : > { %v512_v17 = vmul.f32 %v695_v15, %v511_v16 }
 0x18c   : > { %513 = vst [vmem:[%s398_s17] sm:$0xff] %v512_v17 }
 0x18d   : > { %922 = shalt.err (!%p919_p0)
}
 0x18e   : > { %s923_s29 = scalar_lea.hbm %s1301_s16, 128  ;;  %s927_s27 = scalar_lea.hbm %s1356_s6, 256 }
 0x18f   : > { %p924_p3 = scmp.ne.s32.totalorder %s1301_s16, %s923_s29  ;;  %p928_p10 = scmp.lt.u32.totalorder %s1301_s16, %s1356_s6 }
 0x190   : > { %p929_p4 = scmp.lt.u32.totalorder %s927_s27, %s923_s29  ;;  %p931_p8 = scmp.lt.u32.totalorder %s923_s29, %s1301_s16 }
 0x191   : > { %p925_p1 = pnand %p924_p3, %p1390_p9 }
 0x192   : > { %p930_p7 = por %p929_p4, %p928_p10 }
 0x193   : > { %p926_p12 = pneg %p925_p1 }
 0x194   : > { %p932_p6 = por %p931_p8, %p930_p7 }
 0x196   : > { %p933_p13 = pnand %p932_p6, %p926_p12 }
 0x198   : > { %936 = shalt.err (!%p933_p13)
}
 0x199   : > { %717 = dma.vmem_to_hbm [thread:$0]  (%p1390_p9), %s1303_s19, 128, %s1301_s16, %s515_s11  }
 0x19a PF: > { %s1391_s1 = sld [smem:[#allocation17_spill]]  ;;  %s1392_s7 = sld [smem:[#allocation23_spill]] }
 0x19b   : > { %s1393_s25 = sld [smem:[#allocation20_spill]] }
 0x1a0   : > { %s540_s26 = sand.u32 1, %s1391_s1   ;;  %p1394_p11 = scmp.ne.s32.totalorder %s1392_s7, 0 }
 0x1a1   : > { %p1395_p2 = scmp.ge.s32.totalorder %s1393_s25, 2  ;;  %s541_s15 = scalar_lea.sflag [#allocation6], %s540_s26 }
 0x1a3   : > { %p733_p5 = pnand %p1395_p2, %p1394_p11 }
 0x1a5   : > { %974 = dma.done.wait (!%p733_p5), %s541_s15, 128  }
 0x1a6   : > { %976 = vsyncadd (!%p733_p5), %s541_s15, 4294967168  ;;  %s28_s26 = sadd.s32 1, %s1393_s25   ;;  %s1396_s13 = sld [smem:[#allocation18_spill]] }
 0x1a7   : > { %p25_p0 = scmp.ge.s32.totalorder %s28_s26, 4   ;;  %s1397_s23 = sld [smem:[#allocation22_spill]] }
 0x1a8   : > { %s1398_s24 = sld [smem:[#allocation19_spill]]  ;;  %s1399_s25 = sld [smem:[#allocation21_spill]] }
 0x1a9   : > { %s1400_s21 = smov %s983_s22  ;;  %27 = sbr.rel (!%p25_p0) target bundleno = 12 (0xc), region = 134 }
 0x1ac   : > { %s1401_s22 = smov %s1396_s13 }
 0x1b0   :  { %546 = vsyncpa [#allocation5], 1 }
 0x1b1   :  { %548 = vsyncpa [#allocation5 + $0x1], 1 }
 0x1b2   :  { %549 = vsyncpa [#allocation8], 1 }
 0x1b3   :  { %551 = vsyncpa [#allocation8 + $0x1], 1 }
 0x1b4   :  { %552 = vsyncpa [#allocation11], 1 }
 0x1b5   :  { %554 = vsyncpa [#allocation11 + $0x1], 1 }
 0x1b6   :  { %555 = vsyncpa [#allocation6], 1 }
 0x1b7   :  { %557 = vsyncpa [#allocation6 + $0x1], 1 }

</bundles_post_ra>
